<compile_context>
chip_gen: v5e
topology: v5e:2x2
jax: 0.10.0
libtpu: 0.0.40
codegen_flags: <defaults>
</compile_context>

<pallas_src>
import functools

import jax
import jax.numpy as jnp
from jax import lax
from jax.experimental import pallas as pl
from jax.experimental.pallas import tpu as pltpu


def _sh_self_attention_kernel(x_ref, wq_ref, wk_ref, wv_ref, z_ref, attn_ref,
                              *, inv_scale):
    """One grid step = one batch row.

    x_ref    : (1, S, D)  input block for this batch element
    w*_ref   : (D, E)     pre-transposed projection weights
    z_ref    : (1, S, E)  attention output
    attn_ref : (1, S, S)  normalized attention weights
    """
    x = x_ref[0]  # (S, D)

    # QKV projections on the MXU with f32 accumulation.
    # Scaling q and k by embed_size**-0.25 each matches the torch forward.
    q = jnp.dot(x, wq_ref[...], preferred_element_type=jnp.float32) * inv_scale
    k = jnp.dot(x, wk_ref[...], preferred_element_type=jnp.float32) * inv_scale
    v = jnp.dot(x, wv_ref[...], preferred_element_type=jnp.float32)

    # scores[i, j] = q[i] . k[j]  -- contract the embedding axis of BOTH
    # operands so we never materialize k.T (no XLU transpose).
    scores = lax.dot_general(
        q, k,
        dimension_numbers=(((1,), (1,)), ((), ())),
        preferred_element_type=jnp.float32,
    )  # (S, S)

    # Numerically stable row softmax (softmax over dim=2 in the torch module).
    scores = scores - jnp.max(scores, axis=-1, keepdims=True)
    e = jnp.exp(scores)
    attn = e / jnp.sum(e, axis=-1, keepdims=True)

    z = jnp.dot(attn, v, preferred_element_type=jnp.float32)  # (S, E)

    attn_ref[0] = attn
    z_ref[0] = z


def sh_self_attention(x, wq, wk, wv):
    """x: (B, S, D); wq/wk/wv: (E, D) in torch nn.Linear layout.

    Returns (z, attn_w_normalized): (B, S, E), (B, S, S)."""
    B, S, D = x.shape
    E = wq.shape[0]
    assert wq.shape == wk.shape == wv.shape == (E, D)

    # Pre-transpose once in the wrapper (layout plumbing) so every kernel
    # matmul is a standard (M, K) x (K, N) MXU contraction.
    wq_t = wq.T.astype(jnp.float32)
    wk_t = wk.T.astype(jnp.float32)
    wv_t = wv.T.astype(jnp.float32)
    x = x.astype(jnp.float32)

    kernel = functools.partial(
        _sh_self_attention_kernel,
        inv_scale=float(1.0 / (E ** 0.25)),
    )

    grid_spec = pltpu.PrefetchScalarGridSpec(
        num_scalar_prefetch=0,
        grid=(B,),
        in_specs=[
            pl.BlockSpec((1, S, D), lambda b: (b, 0, 0)),  # this batch row of X
            pl.BlockSpec((D, E), lambda b: (0, 0)),        # Wq^T (VMEM-resident)
            pl.BlockSpec((D, E), lambda b: (0, 0)),        # Wk^T (VMEM-resident)
            pl.BlockSpec((D, E), lambda b: (0, 0)),        # Wv^T (VMEM-resident)
        ],
        out_specs=[
            pl.BlockSpec((1, S, E), lambda b: (b, 0, 0)),  # z
            pl.BlockSpec((1, S, S), lambda b: (b, 0, 0)),  # attention weights
        ],
    )

    z, attn = pl.pallas_call(
        kernel,
        out_shape=(
            jax.ShapeDtypeStruct((B, S, E), jnp.float32),
            jax.ShapeDtypeStruct((B, S, S), jnp.float32),
        ),
        grid_spec=grid_spec,
        compiler_params=pltpu.CompilerParams(
            # Batch rows are fully independent -> shard across TCs on v7x.
            dimension_semantics=("parallel",),
        ),
    )(x, wq_t, wk_t, wv_t)
    return z, attn


if __name__ == "__main__":
    # Small shapes consistent with the module: batch=2, seq=8, input_size=32.
    B, S, D = 2, 8, 32
    key = jax.random.PRNGKey(0)
    kx, kq, kk, kv = jax.random.split(key, 4)

    x = jax.random.normal(kx, (B, S, D), dtype=jnp.float32)
    # nn.Linear weights (embed_size, input_size), bias=False.
    wq = jax.random.normal(kq, (D, D), dtype=jnp.float32) * (1.0 / jnp.sqrt(D))
    wk = jax.random.normal(kk, (D, D), dtype=jnp.float32) * (1.0 / jnp.sqrt(D))
    wv = jax.random.normal(kv, (D, D), dtype=jnp.float32) * (1.0 / jnp.sqrt(D))

    z, attn = sh_self_attention(x, wq, wk, wv)
    z = jax.block_until_ready(z)
    attn = jax.block_until_ready(attn)

    # Pure-JAX reference mirroring the PyTorch forward.
    hp = lax.Precision.HIGHEST
    scale = D ** 0.25
    q_ref = jnp.einsum("bsd,ed->bse", x, wq, precision=hp) / scale
    k_ref = jnp.einsum("bsd,ed->bse", x, wk, precision=hp) / scale
    v_ref = jnp.einsum("bsd,ed->bse", x, wv, precision=hp)
    scores_ref = jnp.einsum("bqe,bke->bqk", q_ref, k_ref, precision=hp)
    attn_ref = jax.nn.softmax(scores_ref, axis=-1)
    z_ref = jnp.einsum("bqk,bke->bqe", attn_ref, v_ref, precision=hp)

    assert z.shape == (B, S, D) and attn.shape == (B, S, S)
    assert jnp.allclose(attn, attn_ref, atol=1e-4, rtol=1e-3), "attn mismatch"
    assert jnp.allclose(z, z_ref, atol=1e-4, rtol=1e-3), "z mismatch"

    print("KERNEL_OK")
</pallas_src>

<mosaic_0001>
module attributes {stable_mosaic.version = 11 : i64} {
  func.func @_sh_self_attention_kernel(%arg0: i32, %arg1: memref<1x8x32xf32, #tpu.memory_space<vmem>>, %arg2: memref<32x32xf32, #tpu.memory_space<vmem>>, %arg3: memref<32x32xf32, #tpu.memory_space<vmem>>, %arg4: memref<32x32xf32, #tpu.memory_space<vmem>>, %arg5: memref<1x8x32xf32, #tpu.memory_space<vmem>>, %arg6: memref<1x8x8xf32, #tpu.memory_space<vmem>>) attributes {dimension_semantics = [#tpu.dimension_semantics<parallel>], iteration_bounds = array<i64: 2>, scalar_prefetch = 0 : i64, scratch_operands = 0 : i64, tpu.core_type = #tpu.core_type<tc>, window_params = [{transform_indices = @transform_0, window_bounds = array<i64: 1, 8, 32>}, {pipeline_mode = #tpu.pipeline_mode<synchronous>, transform_indices = @transform_1, window_bounds = array<i64: 32, 32>}, {pipeline_mode = #tpu.pipeline_mode<synchronous>, transform_indices = @transform_2, window_bounds = array<i64: 32, 32>}, {pipeline_mode = #tpu.pipeline_mode<synchronous>, transform_indices = @transform_3, window_bounds = array<i64: 32, 32>}, {transform_indices = @transform_4, window_bounds = array<i64: 1, 8, 32>}, {transform_indices = @transform_5, window_bounds = array<i64: 1, 8, 8>}]} {
    %c0 = arith.constant 0 : index
    %c0_0 = arith.constant 0 : index
    %c0_1 = arith.constant 0 : index
    %0 = vector.load %arg1[%c0, %c0_0, %c0_1] : memref<1x8x32xf32, #tpu.memory_space<vmem>>, vector<1x8x32xf32>
    %1 = vector.shape_cast %0 : vector<1x8x32xf32> to vector<8x32xf32>
    %c0_2 = arith.constant 0 : index
    %c0_3 = arith.constant 0 : index
    %2 = vector.load %arg2[%c0_2, %c0_3] : memref<32x32xf32, #tpu.memory_space<vmem>>, vector<32x32xf32>
    %cst = arith.constant dense<0.000000e+00> : vector<8x32xf32>
    %3 = tpu.matmul %1, %2, %cst {dimension_numbers = #tpu.dot_dimension_numbers<[1], [0], [0], [1], [0, 0, 1, 1], [], []>} : vector<8x32xf32>, vector<32x32xf32>, vector<8x32xf32> -> vector<8x32xf32>
    %cst_4 = arith.constant 0.420448214 : f32
    %4 = vector.broadcast %cst_4 : f32 to vector<8x32xf32>
    %5 = arith.mulf %3, %4 : vector<8x32xf32>
    %c0_5 = arith.constant 0 : index
    %c0_6 = arith.constant 0 : index
    %6 = vector.load %arg3[%c0_5, %c0_6] : memref<32x32xf32, #tpu.memory_space<vmem>>, vector<32x32xf32>
    %cst_7 = arith.constant dense<0.000000e+00> : vector<8x32xf32>
    %7 = tpu.matmul %1, %6, %cst_7 {dimension_numbers = #tpu.dot_dimension_numbers<[1], [0], [0], [1], [0, 0, 1, 1], [], []>} : vector<8x32xf32>, vector<32x32xf32>, vector<8x32xf32> -> vector<8x32xf32>
    %cst_8 = arith.constant 0.420448214 : f32
    %8 = vector.broadcast %cst_8 : f32 to vector<8x32xf32>
    %9 = arith.mulf %7, %8 : vector<8x32xf32>
    %c0_9 = arith.constant 0 : index
    %c0_10 = arith.constant 0 : index
    %10 = vector.load %arg4[%c0_9, %c0_10] : memref<32x32xf32, #tpu.memory_space<vmem>>, vector<32x32xf32>
    %cst_11 = arith.constant dense<0.000000e+00> : vector<8x32xf32>
    %11 = tpu.matmul %1, %10, %cst_11 {dimension_numbers = #tpu.dot_dimension_numbers<[1], [0], [0], [1], [0, 0, 1, 1], [], []>} : vector<8x32xf32>, vector<32x32xf32>, vector<8x32xf32> -> vector<8x32xf32>
    %cst_12 = arith.constant dense<0.000000e+00> : vector<8x8xf32>
    %12 = tpu.matmul %5, %9, %cst_12 {dimension_numbers = #tpu.dot_dimension_numbers<[1], [1], [0], [0], [0, 0, 1, 0], [], []>} : vector<8x32xf32>, vector<8x32xf32>, vector<8x8xf32> -> vector<8x8xf32>
    %cst_13 = arith.constant dense<0xFF800000> : vector<8xf32>
    %13 = vector.multi_reduction <maximumf>, %12, %cst_13 [1] : vector<8x8xf32> to vector<8xf32>
    %14 = vector.shape_cast %13 : vector<8xf32> to vector<8x1xf32>
    %15 = vector.broadcast %14 : vector<8x1xf32> to vector<8x8xf32>
    %16 = arith.subf %12, %15 : vector<8x8xf32>
    %17 = math.exp %16 : vector<8x8xf32>
    %cst_14 = arith.constant dense<0.000000e+00> : vector<8xf32>
    %18 = vector.multi_reduction <add>, %17, %cst_14 [1] : vector<8x8xf32> to vector<8xf32>
    %19 = vector.shape_cast %18 : vector<8xf32> to vector<8x1xf32>
    %20 = vector.broadcast %19 : vector<8x1xf32> to vector<8x8xf32>
    %21 = arith.divf %17, %20 : vector<8x8xf32>
    %cst_15 = arith.constant dense<0.000000e+00> : vector<8x32xf32>
    %22 = tpu.matmul %21, %11, %cst_15 {dimension_numbers = #tpu.dot_dimension_numbers<[1], [0], [0], [1], [0, 0, 1, 1], [], []>} : vector<8x8xf32>, vector<8x32xf32>, vector<8x32xf32> -> vector<8x32xf32>
    %c0_16 = arith.constant 0 : index
    %c0_17 = arith.constant 0 : index
    %c0_18 = arith.constant 0 : index
    %23 = vector.load %arg6[%c0_16, %c0_17, %c0_18] : memref<1x8x8xf32, #tpu.memory_space<vmem>>, vector<1x8x8xf32>
    %24 = vector.shape_cast %23 : vector<1x8x8xf32> to vector<8x8xf32>
    %25 = vector.shape_cast %21 : vector<8x8xf32> to vector<1x8x8xf32>
    tpu.vector_store %arg6[%c0_16, %c0_17, %c0_18], %25 {strides = array<i32>} : memref<1x8x8xf32, #tpu.memory_space<vmem>>, vector<1x8x8xf32>,
    %c0_19 = arith.constant 0 : index
    %c0_20 = arith.constant 0 : index
    %c0_21 = arith.constant 0 : index
    %26 = vector.load %arg5[%c0_19, %c0_20, %c0_21] : memref<1x8x32xf32, #tpu.memory_space<vmem>>, vector<1x8x32xf32>
    %27 = vector.shape_cast %26 : vector<1x8x32xf32> to vector<8x32xf32>
    %28 = vector.shape_cast %22 : vector<8x32xf32> to vector<1x8x32xf32>
    tpu.vector_store %arg5[%c0_19, %c0_20, %c0_21], %28 {strides = array<i32>} : memref<1x8x32xf32, #tpu.memory_space<vmem>>, vector<1x8x32xf32>,
    return
  }
  func.func @transform_0(%arg0: i32) -> (i32, i32, i32) {
    %c0_i32 = arith.constant 0 : i32
    %c0_i32_0 = arith.constant 0 : i32
    %c0_i32_1 = arith.constant 0 : i32
    return %arg0, %c0_i32, %c0_i32_0 : i32, i32, i32
  }
  func.func @transform_1(%arg0: i32) -> (i32, i32) {
    %c0_i32 = arith.constant 0 : i32
    %c0_i32_0 = arith.constant 0 : i32
    %c0_i32_1 = arith.constant 0 : i32
    return %c0_i32, %c0_i32_0 : i32, i32
  }
  func.func @transform_2(%arg0: i32) -> (i32, i32) {
    %c0_i32 = arith.constant 0 : i32
    %c0_i32_0 = arith.constant 0 : i32
    %c0_i32_1 = arith.constant 0 : i32
    return %c0_i32, %c0_i32_0 : i32, i32
  }
  func.func @transform_3(%arg0: i32) -> (i32, i32) {
    %c0_i32 = arith.constant 0 : i32
    %c0_i32_0 = arith.constant 0 : i32
    %c0_i32_1 = arith.constant 0 : i32
    return %c0_i32, %c0_i32_0 : i32, i32
  }
  func.func @transform_4(%arg0: i32) -> (i32, i32, i32) {
    %c0_i32 = arith.constant 0 : i32
    %c0_i32_0 = arith.constant 0 : i32
    %c0_i32_1 = arith.constant 0 : i32
    return %arg0, %c0_i32, %c0_i32_0 : i32, i32, i32
  }
  func.func @transform_5(%arg0: i32) -> (i32, i32, i32) {
    %c0_i32 = arith.constant 0 : i32
    %c0_i32_0 = arith.constant 0 : i32
    %c0_i32_1 = arith.constant 0 : i32
    return %arg0, %c0_i32, %c0_i32_0 : i32, i32, i32
  }
}

</mosaic_0001>

<bundles_post_ra>
// kernel: tpu_custom_call.1
= control target key start
LH: loop header
LB: loop body
LE: loop exit
PB: predicated region body
PF: predicated region fallthrough
CT: control target
= control target key end

     0   :  { %11 = vsyncpa [#allocation3], 0  ;;  %s1188_s0 = inlined_call_operand.hbm [shape: f32[2,8,32], index: 0, kind: input, shape index: {}]   ;;  %s1189_s1 = inlined_call_operand.hbm [shape: f32[32,32], index: 1, kind: input, shape index: {}]   ;;  %s1190_s2 = inlined_call_operand.hbm [shape: f32[32,32], index: 2, kind: input, shape index: {}]   ;;  %s1191_s3 = inlined_call_operand.hbm [shape: f32[32,32], index: 3, kind: input, shape index: {}]   ;;  %s1192_s4 = inlined_call_operand.hbm [shape: f32[2,8,32], index: 4, kind: output, shape index: {0}]   ;;  %s1193_s5 = inlined_call_operand.hbm [shape: f32[2,8,8], index: 5, kind: output, shape index: {1}]  }
   0x1   :  { %13 = vsyncpa [#allocation3 + $0x1], 0 }
   0x2   :  { %14 = vsyncpa [#allocation6], 0 }
   0x3   :  { %15 = vsyncpa [#allocation9], 0 }
   0x4   :  { %16 = vsyncpa [#allocation4], 0 }
   0x5   :  { %18 = vsyncpa [#allocation4 + $0x1], 0 }
   0x6   :  { %19 = vsyncpa [#allocation12], 0 }
   0x7   :  { %21 = vsyncpa [#allocation12 + $0x1], 0  ;;  %s1003_s18 = smov 0   ;;  %s1005_s19 = smov 0  }
   0x8   :  { %s1007_s20 = smov 0   ;;  %s1009_s21 = smov 0  }
   0x9 LB: > { %s184_s24 = sshll.u32 %s1189_s1, 4  ;;  %s1027_s25 = sadd.s32 4294967295, %s966_s21   ;;  %s966_s21 = sphi %s1009_s21, %s1204_s21   ;;  %s962_s20 = sphi %s1007_s20, %s1203_s20   ;;  %s958_s19 = sphi %s1005_s19, %s1202_s19   ;;  %s954_s18 = sphi %s1003_s18, %s1201_s18   ;;  %s185_s24 = int_to_ptr.hbm [resolvable:$true] %s184_s24 }
   0xa   : > { %p626_p0 = scmp.ge.s32.totalorder %s966_s21, 1  ;;  %p48_p1 = scmp.eq.s32.totalorder %s1027_s25, 0 }
   0xb   : > { %p173_p2 = scmp.lt.s32.totalorder %s966_s21, 3  ;;  %s968_s27 = smov [#allocation5]  }
   0xc   : > { %s186_s28 = sshll.u32 %s968_s27, 4  ;;  %s198_s6 = sshll.u32 %s1190_s2, 4  ;;  %s187_s28 = int_to_ptr.vmem [resolvable:$true] %s186_s28  ;;  %s199_s6 = int_to_ptr.hbm [resolvable:$true] %s198_s6 }
   0xd   : > { %p1032_p3 = pnand %p626_p0, %p173_p2  ;;  %s212_s10 = sshll.u32 %s1191_s3, 4  ;;  %s213_s10 = int_to_ptr.hbm [resolvable:$true] %s212_s10 }
   0xe   : > { %s969_s11 = smov [#allocation7]   ;;  %s970_s13 = smov 128  }
   0xf   : > { %p670_p4 = pneg %p1032_p3  ;;  %s200_s12 = sshll.u32 %s969_s11, 4  ;;  %s201_s12 = int_to_ptr.vmem [resolvable:$true] %s200_s12 }
  0x10   : > { %s971_s14 = smov 8   ;;  %s972_s15 = smov [#allocation8]  }
  0x11   : > { %p1044_p6 = pnand %p670_p4, %p48_p1  ;;  %s214_s16 = sshll.u32 %s972_s15, 4  ;;  %s215_s16 = int_to_ptr.vmem [resolvable:$true] %s214_s16 }
  0x12   : > { %s625_s17 = sadd.s32 4294967294, %s966_s21   ;;  %s1059_s22 = sadd.s32 1, %s966_s21  }
  0x13   : > { %673 = dma.hbm_to_vmem [thread:$0]  (!%p1044_p6), %s185_s24, 512, %s187_s28, [#allocation6], %s970_s13, %s970_s13, %s971_s14  }
  0x14   : > { %676 = dma.hbm_to_vmem [thread:$0]  (!%p1044_p6), %s199_s6, 512, %s201_s12, [#allocation6], %s970_s13, %s970_s13, %s971_s14  }
  0x15   : > { %679 = dma.hbm_to_vmem [thread:$0]  (!%p1044_p6), %s213_s10, 512, %s215_s16, [#allocation9], %s970_s13, %s970_s13, %s971_s14  }
  0x16   : > { %s34_s23 = sadd.s32 1, %s962_s20  ;;  %s31_s24 = ssub.s32 %s966_s21, %s1059_s22 }
  0x17   : > { %p41_p7 = scmp.ne.s32.totalorder %s962_s20, %s958_s19  ;;  %p32_p8 = scmp.eq.s32.totalorder %s31_s24, 0 }
  0x18   : > { %p42_p9 = scmp.eq.s32.totalorder %s966_s21, 0  ;;  %p47_p10 = scmp.ne.s32.totalorder %s958_s19, %s954_s18 }
  0x19   : > { %p134_p11 = scmp.eq.s32.totalorder %s1027_s25, 1  ;;  %p140_p0 = scmp.eq.s32.totalorder %s625_s17, 1 }
  0x1a   : > { %s1071_s27 = scalar_select %p32_p8, %s962_s20, %s34_s23  }
  0x1b   : > { %p1075_p12 = por %p48_p1, %p47_p10  ;;  %p1079_p13 = por %p134_p11, %p41_p7 }
  0x1c   : > { %p43_p2 = por %p42_p9, %p41_p7  ;;  %s228_s30 = sand.u32 1, %s962_s20  }
  0x1d   : > { %p1084_p4 = por %p140_p0, %p47_p10  ;;  %p694_p6 = scmp.lt.s32.totalorder %s966_s21, 2 }
  0x1e   : > { %s631_s7 = sshll.u32 %s228_s30, 3  ;;  %s632_s8 = sshll.u32 %s966_s21, 3 }
  0x1f   : > { %s236_s11 = scalar_lea.hbm %s1188_s0, %s632_s8  ;;  %s232_s13 = scalar_lea.vmem [#allocation2], %s631_s7 }
  0x20   : > { %s238_s12 = sshll.u32 %s236_s11, 4  ;;  %s240_s14 = sshll.u32 %s232_s13, 4  ;;  %s239_s12 = int_to_ptr.hbm [resolvable:$true] %s238_s12  ;;  %s241_s14 = int_to_ptr.vmem [resolvable:$true] %s240_s14 }
  0x21   : > { %p1093_p8 = pnand %p694_p6, %p43_p2  ;;  %s229_s16 = scalar_lea.sflag [#allocation3], %s228_s30 }
  0x22   : > { %s830_s17 = sshra.s32 %s239_s12, 4  ;;  %s837_s7 = scalar_lea.hbm %s1188_s0, 16  ;;  %s831_s17 = int_to_ptr.hbm [resolvable:$true] %s830_s17 }
  0x23   : > { %s832_s23 = scalar_lea.hbm %s831_s17, 8  ;;  %p834_p9 = pneg %p1093_p8 }
  0x24   : > { %p833_p7 = scmp.ne.s32.totalorder %s831_s17, %s832_s23  ;;  %p838_p0 = scmp.lt.s32.totalorder %s831_s17, %s1188_s0 }
  0x25   : > { %p839_p2 = scmp.lt.s32.totalorder %s837_s7, %s832_s23 }
  0x26   : > { %p835_p10 = pnand %p834_p9, %p833_p7 }
  0x27   : > { %p840_p6 = por %p839_p2, %p838_p0 }
  0x28   : > { %p836_p11 = pneg %p835_p10 }
  0x2a   : > { %p841_p5 = pnand %p840_p6, %p836_p11 }
  0x2c   : > { %844 = shalt.err (!%p841_p5)
}
  0x2d   : > { %683 = dma.hbm_to_vmem [thread:$0]  (!%p1093_p8), %s239_s12, 128, %s241_s14, %s229_s16  }
  0x2e   : > { %249 = sbr.rel (%p1032_p3) target bundleno = 726 (0x2d6), region = 36  ;;  %s1110_s30 = sand.u32 (!%p1032_p3), 1, %s958_s19  }
  0x2f   : > { %s1113_s11 = sshll.u32 (!%p1032_p3), %s1110_s30, 3  ;;  %s252_s13 = scalar_lea.sflag (!%p1032_p3), [#allocation3], %s1110_s30 }
  0x30   : > { %s255_s17 = scalar_lea.vmem (!%p1032_p3), [#allocation2], %s1113_s11 }
  0x33   : > { %933 = dma.done.wait (%p1075_p12), %s252_s13, 128  }
  0x34   : > { %935 = vsyncadd (%p1075_p12), %s252_s13, 4294967168 }
  0x35   : > { %937 = dma.done.wait (%p48_p1), [#allocation6], 1024  }
  0x36   : > { %939 = vsyncadd (%p48_p1), [#allocation6], 4294966272 }
  0x37   : > { %941 = dma.done.wait (%p48_p1), [#allocation9], 512  }
  0x38   : > { %943 = vsyncadd (%p48_p1), [#allocation9], 4294966784  ;;  %v336_v0 = vld [vmem:[#allocation7 + $0x18] sm:$0xff]  ;;  %v335_v1 = vld [vmem:[#allocation7 + $0x10] sm:$0xff]  ;;  %vm308_vm0 = vcmask 261120   ;;  %vm408_vm1 = vcmask 64512  }
  0x39   : > { %v307_v2 = vld [vmem:[#allocation5 + $0x18] sm:$0xff]  ;;  %349 = vmatpush.msra.mxu1 %v336_v0  ;;  %v306_v3 = vld [vmem:[#allocation5 + $0x10] sm:$0xff]  ;;  %v334_v4 = vld [vmem:[#allocation7 + $0x8] sm:$0xff]  ;;  %s302_s26 = scalar_lea.vmem [#allocation11], %s1113_s11  ;;  %s648_s28 = sshll.u32 %s1027_s25, 3 }
  0x3a   : > { %324 = vmatpush.msra.mxu0 %v307_v2  ;;  %v305_v5 = vld [vmem:[#allocation5 + $0x8] sm:$0xff]  ;;  %v333_v6 = vld [vmem:[#allocation7] sm:$0xff]  ;;  %v303_v8 = vld [vmem:[%s255_s17] sm:$0xff]  ;;  %s488_s15 = scalar_lea.hbm %s1193_s5, %s648_s28  ;;  %s490_s16 = sshll.u32 %s302_s26, 4  ;;  %s491_s16 = int_to_ptr.vmem [resolvable:$true] %s490_s16 }
  0x3b   : > { %350 = vmatpush.msra.mxu1 %v335_v1  ;;  %v304_v7 = vld [vmem:[#allocation5] sm:$0xff]  ;;  %v361_v15 = vld [vmem:[#allocation8 + $0x18] sm:$0xff]  ;;  %v360_v16 = vld [vmem:[#allocation8 + $0x10] sm:$0xff]  ;;  %s492_s23 = sshll.u32 %s488_s15, 4  ;;  %s464_s24 = scalar_lea.sflag [#allocation12], %s1110_s30  ;;  %s493_s23 = int_to_ptr.hbm [resolvable:$true] %s492_s23 }
  0x3c   : > { %325 = vmatpush.msra.mxu0 %v306_v3  ;;  %374 = vmatpush.msra.mxu2 %v361_v15  ;;  %v359_v17 = vld [vmem:[#allocation8 + $0x8] sm:$0xff]  ;;  %v358_v18 = vld [vmem:[#allocation8] sm:$0xff]  ;;  %s874_s8 = sshra.s32 %s493_s23, 4  ;;  %s880_s25 = scalar_lea.hbm %s1193_s5, 16  ;;  %s875_s8 = int_to_ptr.hbm [resolvable:$true] %s874_s8 }
  0x3d   : > { %351 = vmatpush.msra.mxu1 %v334_v4  ;;  %s876_s7 = scalar_lea.hbm %s875_s8, 8  ;;  %p881_p12 = scmp.lt.s32.totalorder %s875_s8, %s1193_s5 }
  0x3e   : > { %326 = vmatpush.msra.mxu0 %v305_v5  ;;  %375 = vmatpush.msra.mxu2 %v360_v16  ;;  %p877_p1 = scmp.ne.s32.totalorder %s875_s8, %s876_s7  ;;  %p882_p8 = scmp.lt.s32.totalorder %s880_s25, %s876_s7 }
  0x3f   : > { %352 = vmatpush.msra.mxu1 %v333_v6 }
  0x40   : > { %327 = vmatpush.msra.mxu0 %v304_v7  ;;  %641 = vmatmul.msk.f32.vlgmr.msra.gmra.mxu1 %vm308_vm0, %v303_v8  ;;  %p878_p3 = pnand %p877_p1, %p1079_p13  ;;  %p883_p7 = por %p882_p8, %p881_p12 }
  0x41   : > { %640 = vmatmul.msk.f32.vlgmr.msra.gmra.mxu0 %vm308_vm0, %v303_v8  ;;  %376 = vmatpush.msra.mxu2 %v359_v17 }
  0x42   : > { %p879_p5 = pneg %p878_p3 }
  0x43   : > { %377 = vmatpush.msra.mxu2 %v358_v18 }
  0x44   : > { %642 = vmatmul.msk.f32.vlgmr.msra.gmra.mxu2 %vm308_vm0, %v303_v8  ;;  %p884_p9 = pnand %p883_p7, %p879_p5 }
  0xbd   : > { %v354_v9 = vpop.f32.mrf.mxu1 }
  0xbe   : > { %v329_v10 = vpop.f32.mrf.mxu0  ;;  %v357_v11 = vmul.f32 0.4204482, %v354_v9 }
  0xbf   : > { %v332_v12 = vmul.f32 0.4204482, %v329_v10 }
  0xc0   : > { %643 = vmatpush.xpose.msk.msra.mxu3 %vm308_vm0, %v357_v11 }
  0xc3   : > { %644 = vmatmul.msk.f32.vlgmr.msra.gmra.mxu3 %vm308_vm0, %v332_v12 }
  0xc7   : > { %v379_v24 = vpop.f32.mrf.mxu2 }
  0xc8   : > { %451 = vmatpush.msrb.mxu3 %v379_v24 }
 0x146   : > { %v405_v13 = vpop.f32.mrf.mxu3 }
 0x147   : > { %v409_v14 = vsel %vm408_vm1, %v405_v13, -inf }
 0x148   : > { %410 = vmax.xlane.f32.xlu0 %v409_v14 }
 0x1bb   : > { %v411_v19 = vpop.xlane.xlu0 %410 }
 0x1bc   : > { %v412_v20 = vsub.f32 %v405_v13, %v411_v19 }
 0x1be   : > { %v413_v21 = vmul.f32 1.442695, %v412_v20 }
 0x1c0   : > { %736 = vpow2.f32 %v413_v21 }
 0x1c6   : > { %v737_v22 = vpop.eup %736 }
 0x1c7   : > { %v415_v23 = vsel %vm408_vm1, %v737_v22, 0.0 }
 0x1c8   : > { %416 = vadd.xlane.f32.xlu0 %v415_v23 }
 0x23b   : > { %v417_v25 = vpop.xlane.xlu0 %416 }
 0x23c   : > { %738 = vrcp.f32 %v417_v25  ;;  %v429_v29 = vand.u32 2147483648, %v417_v25  ;;  %v427_v31 = vand.u32 2147483647, %v417_v25  ;;  %vm423_vm3 = vweird.f32 %v417_v25 }
 0x23e   : > { %v430_v33 = vor.u32 1.1754944e-38, %v429_v29  ;;  %vm428_vm5 = vcmp.eq.f32.partialorder %v427_v31, 8.507059e+37 }
 0x242   : > { %v739_v26 = vpop.eup %738 }
 0x243   : > { %v419_v27 = vmul.f32 %v739_v26, %v417_v25  ;;  %vm424_vm2 = vweird.f32 %v739_v26 }
 0x244   : > { %vm425_vm4 = vmor %vm423_vm3, %vm424_vm2 }
 0x245   : > { %v420_v28 = vsub.f32 1.0, %v419_v27 }
 0x247   : > { %v421_v30 = vmul.f32 %v739_v26, %v420_v28 }
 0x249   : > { %v422_v32 = vadd.f32 %v739_v26, %v421_v30 }
 0x24b   : > { %v426_v34 = vsel %vm425_vm4, %v739_v26, %v422_v32 }
 0x24c   : > { %v431_v35 = vsel %vm428_vm5, %v430_v33, %v426_v34 }
 0x24d   : > { %v432_v36 = vmul.f32 %v737_v22, %v431_v35 }
 0x24f   : > { %645 = vmatmul.msk.f32.vlgmr.msrb.gmra.mxu3 %vm408_vm1, %v432_v36  ;;  %456 = vst.msk [vmem:[%s302_s26] sm:$0xff] %vm408_vm1, %v432_v36 }
 0x250   : > { %887 = shalt.err (!%p884_p9)
}
 0x251   : > { %667 = dma.vmem_to_hbm [thread:$0]  (%p1079_p13), %s491_s16, 128, %s493_s23, %s464_s24  }
 0x252   : > { %s474_s14 = scalar_lea.hbm %s1192_s4, %s648_s28  ;;  %s295_s15 = scalar_lea.vmem [#allocation10], %s1113_s11 }
 0x253   : > { %s476_s9 = sshll.u32 %s295_s15, 4  ;;  %s478_s10 = sshll.u32 %s474_s14, 4  ;;  %s477_s9 = int_to_ptr.vmem [resolvable:$true] %s476_s9  ;;  %s479_s10 = int_to_ptr.hbm [resolvable:$true] %s478_s10 }
 0x254   : > { %s459_s8 = scalar_lea.sflag [#allocation4], %s1110_s30  ;;  %s902_s7 = sshra.s32 %s479_s10, 4  ;;  %s903_s7 = int_to_ptr.hbm [resolvable:$true] %s902_s7 }
 0x255   : > { %s904_s25 = scalar_lea.hbm %s903_s7, 8  ;;  %s908_s28 = scalar_lea.hbm %s1192_s4, 16 }
 0x256   : > { %p905_p10 = scmp.ne.s32.totalorder %s903_s7, %s904_s25  ;;  %p909_p2 = scmp.lt.s32.totalorder %s903_s7, %s1192_s4 }
 0x257   : > { %p910_p6 = scmp.lt.s32.totalorder %s908_s28, %s904_s25 }
 0x258   : > { %p906_p11 = pnand %p905_p10, %p1079_p13 }
 0x259   : > { %p911_p1 = por %p910_p6, %p909_p2 }
 0x25a   : > { %p907_p0 = pneg %p906_p11 }
 0x25c   : > { %p912_p3 = pnand %p911_p1, %p907_p0 }
 0x2d2   : > { %v453_v37 = vpop.f32.mrf.mxu3 }
 0x2d3   : > { %457 = vst.msk [vmem:[%s295_s15] sm:$0xff] %vm308_vm0, %v453_v37 }
 0x2d4   : > { %915 = shalt.err (!%p912_p3)
}
 0x2d5   : > { %666 = dma.vmem_to_hbm [thread:$0]  (%p1079_p13), %s477_s9, 128, %s479_s10, %s459_s8  }
 0x2d6 PF: > { %s504_s30 = sand.u32 1, %s954_s18   ;;  %p1200_p5 = scmp.ge.s32.totalorder %s966_s21, 2 }
 0x2d7   : > { %s505_s13 = scalar_lea.sflag [#allocation4], %s504_s30 }
 0x2d8   : > { %p685_p12 = pnand %p1200_p5, %p1084_p4 }
 0x2da   : > { %p686_p8 = pneg %p685_p12 }
 0x2dc   : > { %945 = dma.done.wait (%p686_p8), %s505_s13, 128  }
 0x2dd   : > { %947 = vsyncadd (%p686_p8), %s505_s13, 4294967168  ;;  %s515_s17 = scalar_lea.sflag [#allocation12], %s504_s30 }
 0x2de   : > { %949 = dma.done.wait (%p686_p8), %s515_s17, 128  }
 0x2df   : > { %951 = vsyncadd (%p686_p8), %s515_s17, 4294967168  ;;  %p24_p13 = scmp.ge.s32.totalorder %s1059_s22, 4   ;;  %s1201_s18 = smov %s958_s19 }
 0x2e0   : > { %s1202_s19 = smov %s962_s20  ;;  %s1203_s20 = smov %s1071_s27 }
 0x2e1   : > { %s1204_s21 = smov %s1059_s22  ;;  %26 = sbr.rel (!%p24_p13) target bundleno = 9 (0x9), region = 110 }
 0x2e6   :  { %521 = vsyncpa [#allocation3], 1 }
 0x2e7   :  { %523 = vsyncpa [#allocation3 + $0x1], 1 }
 0x2e8   :  { %524 = vsyncpa [#allocation6], 1 }
 0x2e9   :  { %525 = vsyncpa [#allocation9], 1 }
 0x2ea   :  { %526 = vsyncpa [#allocation4], 1 }
 0x2eb   :  { %528 = vsyncpa [#allocation4 + $0x1], 1 }
 0x2ec   :  { %529 = vsyncpa [#allocation12], 1 }
 0x2ed   :  { %531 = vsyncpa [#allocation12 + $0x1], 1 }

</bundles_post_ra>
